<compile_context>
chip_gen: v7x
topology: tpu7x:2x2x1
jax: 0.10.0
libtpu: 0.0.40
codegen_flags: <defaults>
</compile_context>

<pallas_src>
import functools
from typing import List

import jax
import jax.numpy as jnp
from jax.experimental import pallas as pl
from jax.experimental.pallas import tpu as pltpu


def _round_up(n: int, m: int) -> int:
    return ((n + m - 1) // m) * m


# ---------------------------------------------------------------------------
# Fused MLP kernel: one batch tile, all layers, everything VMEM-resident.
# ---------------------------------------------------------------------------
def _mlp_kernel(x_ref, *refs, n_layers: int, n_sub: int, sub_rows: int,
                compute_dtype):
    """refs = (w0, b0, w1, b1, ..., w_{L-1}, b_{L-1}, o_ref).

    Processes the (bb, Din) batch tile in `n_sub` sub-chunks of `sub_rows`
    rows so activations stay comfortably inside the vreg file.  Matmuls run
    in `compute_dtype` with f32 accumulation; bias add / ReLU stay f32.
    """
    o_ref = refs[-1]
    wb = refs[:-1]

    def chunk(r0):
        h = x_ref[pl.ds(r0, sub_rows), :]            # already compute_dtype
        for li in range(n_layers):
            w = wb[2 * li][...]                       # compute_dtype (pre-cast)
            b = wb[2 * li + 1][...]                   # f32 (1, Dout_pad)
            acc = jnp.dot(h, w, preferred_element_type=jnp.float32) + b
            if li != n_layers - 1:
                acc = jnp.maximum(acc, 0.0)           # ReLU (Dropout = identity)
                h = acc.astype(compute_dtype)         # feed next MXU pass
            else:
                h = acc
        o_ref[pl.ds(r0, sub_rows), :] = h.astype(o_ref.dtype)

    if n_sub == 1:
        chunk(0)
    else:
        @pl.loop(0, n_sub)
        def _(s):
            chunk(pl.multiple_of(s * sub_rows, sub_rows))


# ---------------------------------------------------------------------------
# Parameter init / padding.
# ---------------------------------------------------------------------------
def init_encoder_params(key, layers_order: List[int], dtype=jnp.float32):
    """Deterministic init mimicking nn.Linear uniform(-1/sqrt(fan_in), +).

    Weights stored as (in_features, out_features) so y = x @ W + b matches
    PyTorch's x @ weight.T + bias.
    """
    params = []
    n_layers = len(layers_order) - 1
    keys = jax.random.split(key, 2 * n_layers)
    for li in range(n_layers):
        d_in, d_out = layers_order[li], layers_order[li + 1]
        bound = 1.0 / float(d_in) ** 0.5
        w = jax.random.uniform(keys[2 * li], (d_in, d_out), dtype,
                               minval=-bound, maxval=bound)
        b = jax.random.uniform(keys[2 * li + 1], (d_out,), dtype,
                               minval=-bound, maxval=bound)
        params.append((w, b))
    return params


def pad_encoder_params(params, compute_dtype=jnp.bfloat16):
    """Prepare params for the fused kernel (done ONCE, outside the call).

    * HIDDEN feature dims are zero-padded to multiples of 128 (lane-dense in
      VMEM).  The FIRST layer keeps its true input width and the LAST layer
      keeps its true output width, because those are the dims streamed to/from
      HBM.
    * Weights are pre-cast to `compute_dtype`; biases stay f32 shaped
      (1, Dout_pad) for the f32 epilogue (no per-step casts in the kernel).
    """
    n = len(params)
    padded = []
    for li, (w, b) in enumerate(params):
        d_in, d_out = w.shape
        d_in_p = d_in if li == 0 else _round_up(d_in, 128)
        d_out_p = d_out if li == n - 1 else _round_up(d_out, 128)
        wp = (jnp.zeros((d_in_p, d_out_p), compute_dtype)
              .at[:d_in, :d_out].set(w.astype(compute_dtype)))
        bp = (jnp.zeros((1, d_out_p), jnp.float32)
              .at[0, :d_out].set(b.astype(jnp.float32)))
        padded.append((wp, bp))
    return padded


# ---------------------------------------------------------------------------
# Forward pass: single fused pallas_call, batch-tiled grid.
# ---------------------------------------------------------------------------
def encoder_forward_pallas(padded_params, x, *, block_batch: int = None,
                           compute_dtype=jnp.bfloat16):
    """x: (B, Din) -> (B, Dout) in compute_dtype. Matches Encoder.forward (eval)."""
    n_layers = len(padded_params)
    batch, d_in = x.shape
    assert d_in == padded_params[0][0].shape[0], "input width mismatch"
    d_out = padded_params[-1][0].shape[1]

    # Stream activations in the compute dtype (halves HBM bytes for bf16).
    x = x.astype(compute_dtype)

    # Batch tile: default 512 rows (amortizes ~0.35us/step pipeline overhead);
    # never exceed the (rounded) batch.  Keep bb a multiple of the 256-row
    # sub-chunk when large.  On v7x the "parallel" batch axis shards the grid
    # across both TensorCores, so big batches keep multiple grid steps.
    bb = 512 if block_batch is None else block_batch
    bb = max(8, min(_round_up(bb, 8), _round_up(batch, 8)))
    if bb > 256:
        bb = max(256, (bb // 256) * 256)
    sub_rows = min(bb, 256)
    n_sub = bb // sub_rows

    # Only batch ROWS are ever padded (no lane padding, no extra HBM pass
    # when batch divides the tile).
    batch_p = _round_up(batch, bb)
    if batch_p != batch:
        x = jnp.pad(x, ((0, batch_p - batch), (0, 0)))

    grid = (batch_p // bb,)

    # Activation streams over the batch grid at TRUE width; every weight/bias
    # maps to the SAME block each step -> stays resident in VMEM.
    in_specs = [pl.BlockSpec((bb, d_in), lambda i: (i, 0))]
    flat_wb = []
    for w, b in padded_params:
        in_specs.append(pl.BlockSpec(w.shape, lambda i: (0, 0)))
        in_specs.append(pl.BlockSpec(b.shape, lambda i: (0, 0)))
        flat_wb.extend([w, b])

    kernel = functools.partial(_mlp_kernel, n_layers=n_layers, n_sub=n_sub,
                               sub_rows=sub_rows, compute_dtype=compute_dtype)

    out = pl.pallas_call(
        kernel,
        out_shape=jax.ShapeDtypeStruct((batch_p, d_out), compute_dtype),
        grid=grid,
        in_specs=in_specs,
        out_specs=pl.BlockSpec((bb, d_out), lambda i: (i, 0)),
        compiler_params=pltpu.CompilerParams(
            dimension_semantics=("parallel",)),
    )(x, *flat_wb)

    if batch_p != batch:
        out = out[:batch]
    return out


def encoder_forward_ref(params, x):
    """Plain-JAX f32 reference (eval-mode dropout, exact matmuls)."""
    h = x.astype(jnp.float32)
    for li, (w, b) in enumerate(params):
        h = jnp.dot(h, w.astype(jnp.float32),
                    precision=jax.lax.Precision.HIGHEST) + b.astype(jnp.float32)
        if li != len(params) - 1:
            h = jnp.maximum(h, 0.0)
    return h


if __name__ == "__main__":
    # Small MLP-encoder shapes: 32 -> 64 -> 48 -> 16, batch 16.
    layers_order = [32, 64, 48, 16]
    batch = 16

    key = jax.random.PRNGKey(0)
    k_params, k_x = jax.random.split(key)

    params = init_encoder_params(k_params, layers_order)
    x = jax.random.normal(k_x, (batch, layers_order[0]), jnp.float32)
    ref = encoder_forward_ref(params, x)

    # bf16 streaming path (recommended default on v5e/v6e/v7x).
    padded_bf16 = pad_encoder_params(params, compute_dtype=jnp.bfloat16)
    out_bf16 = encoder_forward_pallas(padded_bf16, x,
                                      compute_dtype=jnp.bfloat16)
    out_bf16 = jax.block_until_ready(out_bf16)
    assert out_bf16.shape == (batch, layers_order[-1])
    assert jnp.allclose(out_bf16.astype(jnp.float32), ref, atol=1e-1, rtol=1e-1)

    # f32 path (tighter sanity check of the fused structure / padding logic).
    padded_f32 = pad_encoder_params(params, compute_dtype=jnp.float32)
    out_f32 = encoder_forward_pallas(padded_f32, x,
                                     compute_dtype=jnp.float32)
    out_f32 = jax.block_until_ready(out_f32)
    assert out_f32.shape == (batch, layers_order[-1])
    assert jnp.allclose(out_f32.astype(jnp.float32), ref, atol=1e-2, rtol=1e-2)

    print("KERNEL_OK")
</pallas_src>

<mosaic_0001>
module attributes {stable_mosaic.version = 11 : i64} {
  func.func @_mlp_kernel(%arg0: i32, %arg1: memref<16x32xbf16, #tpu.memory_space<vmem>>, %arg2: memref<32x128xbf16, #tpu.memory_space<vmem>>, %arg3: memref<1x128xf32, #tpu.memory_space<vmem>>, %arg4: memref<128x128xbf16, #tpu.memory_space<vmem>>, %arg5: memref<1x128xf32, #tpu.memory_space<vmem>>, %arg6: memref<128x16xbf16, #tpu.memory_space<vmem>>, %arg7: memref<1x16xf32, #tpu.memory_space<vmem>>, %arg8: memref<16x16xbf16, #tpu.memory_space<vmem>>) attributes {dimension_semantics = [#tpu.dimension_semantics<parallel>], iteration_bounds = array<i64: 1>, scalar_prefetch = 0 : i64, scratch_operands = 0 : i64, tpu.core_type = #tpu.core_type<tc>, window_params = [{transform_indices = @transform_0, window_bounds = array<i64: 16, 32>}, {pipeline_mode = #tpu.pipeline_mode<synchronous>, transform_indices = @transform_1, window_bounds = array<i64: 32, 128>}, {pipeline_mode = #tpu.pipeline_mode<synchronous>, transform_indices = @transform_2, window_bounds = array<i64: 1, 128>}, {pipeline_mode = #tpu.pipeline_mode<synchronous>, transform_indices = @transform_3, window_bounds = array<i64: 128, 128>}, {pipeline_mode = #tpu.pipeline_mode<synchronous>, transform_indices = @transform_4, window_bounds = array<i64: 1, 128>}, {pipeline_mode = #tpu.pipeline_mode<synchronous>, transform_indices = @transform_5, window_bounds = array<i64: 128, 16>}, {pipeline_mode = #tpu.pipeline_mode<synchronous>, transform_indices = @transform_6, window_bounds = array<i64: 1, 16>}, {transform_indices = @transform_7, window_bounds = array<i64: 16, 16>}]} {
    %c0 = arith.constant 0 : index
    %c0_0 = arith.constant 0 : index
    %0 = vector.load %arg1[%c0, %c0_0] : memref<16x32xbf16, #tpu.memory_space<vmem>>, vector<16x32xbf16>
    %c0_1 = arith.constant 0 : index
    %c0_2 = arith.constant 0 : index
    %1 = vector.load %arg2[%c0_1, %c0_2] : memref<32x128xbf16, #tpu.memory_space<vmem>>, vector<32x128xbf16>
    %c0_3 = arith.constant 0 : index
    %c0_4 = arith.constant 0 : index
    %2 = vector.load %arg3[%c0_3, %c0_4] : memref<1x128xf32, #tpu.memory_space<vmem>>, vector<1x128xf32>
    %cst = arith.constant dense<0.000000e+00> : vector<16x128xf32>
    %3 = tpu.matmul %0, %1, %cst {dimension_numbers = #tpu.dot_dimension_numbers<[1], [0], [0], [1], [0, 0, 1, 1], [], []>} : vector<16x32xbf16>, vector<32x128xbf16>, vector<16x128xf32> -> vector<16x128xf32>
    %4 = vector.broadcast %2 : vector<1x128xf32> to vector<16x128xf32>
    %5 = arith.addf %3, %4 : vector<16x128xf32>
    %cst_5 = arith.constant 0.000000e+00 : f32
    %6 = vector.broadcast %cst_5 : f32 to vector<16x128xf32>
    %7 = arith.maximumf %5, %6 : vector<16x128xf32>
    %8 = arith.truncf %7 : vector<16x128xf32> to vector<16x128xbf16>
    %c0_6 = arith.constant 0 : index
    %c0_7 = arith.constant 0 : index
    %9 = vector.load %arg4[%c0_6, %c0_7] : memref<128x128xbf16, #tpu.memory_space<vmem>>, vector<128x128xbf16>
    %c0_8 = arith.constant 0 : index
    %c0_9 = arith.constant 0 : index
    %10 = vector.load %arg5[%c0_8, %c0_9] : memref<1x128xf32, #tpu.memory_space<vmem>>, vector<1x128xf32>
    %cst_10 = arith.constant dense<0.000000e+00> : vector<16x128xf32>
    %11 = tpu.matmul %8, %9, %cst_10 {dimension_numbers = #tpu.dot_dimension_numbers<[1], [0], [0], [1], [0, 0, 1, 1], [], []>} : vector<16x128xbf16>, vector<128x128xbf16>, vector<16x128xf32> -> vector<16x128xf32>
    %12 = vector.broadcast %10 : vector<1x128xf32> to vector<16x128xf32>
    %13 = arith.addf %11, %12 : vector<16x128xf32>
    %cst_11 = arith.constant 0.000000e+00 : f32
    %14 = vector.broadcast %cst_11 : f32 to vector<16x128xf32>
    %15 = arith.maximumf %13, %14 : vector<16x128xf32>
    %16 = arith.truncf %15 : vector<16x128xf32> to vector<16x128xbf16>
    %c0_12 = arith.constant 0 : index
    %c0_13 = arith.constant 0 : index
    %17 = vector.load %arg6[%c0_12, %c0_13] : memref<128x16xbf16, #tpu.memory_space<vmem>>, vector<128x16xbf16>
    %c0_14 = arith.constant 0 : index
    %c0_15 = arith.constant 0 : index
    %18 = vector.load %arg7[%c0_14, %c0_15] : memref<1x16xf32, #tpu.memory_space<vmem>>, vector<1x16xf32>
    %cst_16 = arith.constant dense<0.000000e+00> : vector<16x16xf32>
    %19 = tpu.matmul %16, %17, %cst_16 {dimension_numbers = #tpu.dot_dimension_numbers<[1], [0], [0], [1], [0, 0, 1, 1], [], []>} : vector<16x128xbf16>, vector<128x16xbf16>, vector<16x16xf32> -> vector<16x16xf32>
    %20 = vector.broadcast %18 : vector<1x16xf32> to vector<16x16xf32>
    %21 = arith.addf %19, %20 : vector<16x16xf32>
    %22 = arith.truncf %21 : vector<16x16xf32> to vector<16x16xbf16>
    %c0_17 = arith.constant 0 : index
    %c0_18 = arith.constant 0 : index
    %23 = vector.load %arg8[%c0_17, %c0_18] : memref<16x16xbf16, #tpu.memory_space<vmem>>, vector<16x16xbf16>
    tpu.vector_store %arg8[%c0_17, %c0_18], %22 {strides = array<i32>} : memref<16x16xbf16, #tpu.memory_space<vmem>>, vector<16x16xbf16>,
    return
  }
  func.func @transform_0(%arg0: i32) -> (i32, i32) {
    %c0_i32 = arith.constant 0 : i32
    %c0_i32_0 = arith.constant 0 : i32
    return %arg0, %c0_i32 : i32, i32
  }
  func.func @transform_1(%arg0: i32) -> (i32, i32) {
    %c0_i32 = arith.constant 0 : i32
    %c0_i32_0 = arith.constant 0 : i32
    %c0_i32_1 = arith.constant 0 : i32
    return %c0_i32, %c0_i32_0 : i32, i32
  }
  func.func @transform_2(%arg0: i32) -> (i32, i32) {
    %c0_i32 = arith.constant 0 : i32
    %c0_i32_0 = arith.constant 0 : i32
    %c0_i32_1 = arith.constant 0 : i32
    return %c0_i32, %c0_i32_0 : i32, i32
  }
  func.func @transform_3(%arg0: i32) -> (i32, i32) {
    %c0_i32 = arith.constant 0 : i32
    %c0_i32_0 = arith.constant 0 : i32
    %c0_i32_1 = arith.constant 0 : i32
    return %c0_i32, %c0_i32_0 : i32, i32
  }
  func.func @transform_4(%arg0: i32) -> (i32, i32) {
    %c0_i32 = arith.constant 0 : i32
    %c0_i32_0 = arith.constant 0 : i32
    %c0_i32_1 = arith.constant 0 : i32
    return %c0_i32, %c0_i32_0 : i32, i32
  }
  func.func @transform_5(%arg0: i32) -> (i32, i32) {
    %c0_i32 = arith.constant 0 : i32
    %c0_i32_0 = arith.constant 0 : i32
    %c0_i32_1 = arith.constant 0 : i32
    return %c0_i32, %c0_i32_0 : i32, i32
  }
  func.func @transform_6(%arg0: i32) -> (i32, i32) {
    %c0_i32 = arith.constant 0 : i32
    %c0_i32_0 = arith.constant 0 : i32
    %c0_i32_1 = arith.constant 0 : i32
    return %c0_i32, %c0_i32_0 : i32, i32
  }
  func.func @transform_7(%arg0: i32) -> (i32, i32) {
    %c0_i32 = arith.constant 0 : i32
    %c0_i32_0 = arith.constant 0 : i32
    return %arg0, %c0_i32 : i32, i32
  }
}

</mosaic_0001>

<bundles_post_ra>
// kernel: tpu_custom_call.1
= control target key start
LH: loop header
LB: loop body
LE: loop exit
PB: predicated region body
PF: predicated region fallthrough
CT: control target
= control target key end

     0   :  { %12 = vsyncpa [#allocation3], 0  ;;  %s707_s0 = inlined_call_operand.hbm [shape: bf16[16,32], index: 0, kind: input, shape index: {}]   ;;  %s708_s1 = inlined_call_operand.vmem [shape: bf16[32,128], index: 1, kind: input, shape index: {}]   ;;  %s709_s2 = inlined_call_operand.vmem [shape: f32[1,128], index: 2, kind: input, shape index: {}]   ;;  %s710_s3 = inlined_call_operand.vmem [shape: bf16[128,128], index: 3, kind: input, shape index: {}]   ;;  %s711_s4 = inlined_call_operand.vmem [shape: f32[1,128], index: 4, kind: input, shape index: {}]   ;;  %s712_s5 = inlined_call_operand.vmem [shape: bf16[128,16], index: 5, kind: input, shape index: {}]   ;;  %s713_s6 = inlined_call_operand.vmem [shape: f32[1,16], index: 6, kind: input, shape index: {}]   ;;  %s714_s7 = inlined_call_operand.hbm [shape: bf16[16,16], index: 7, kind: output, shape index: {}]  }
   0x1   :  { %13 = vsyncpa [#allocation4], 0  ;;  %s544_s24 = smov [#allocation2]   ;;  %s496_s28 = scalar_lea.hbm %s707_s0, 128 }
   0x2   :  { %s19_s25 = sshll.u32 %s544_s24, 4  ;;  %p497_p0 = scmp.ne.s32.totalorder %s707_s0, %s496_s28  ;;  %s20_s25 = int_to_ptr.vmem [resolvable:$true] %s19_s25 }
   0x3   :  { %p500_p1 = scmp.lt.u32.totalorder %s496_s28, %s707_s0 }
   0x5   :  { %p502_p2 = pnand %p500_p1, %p497_p0 }
   0x7   :  { %505 = shalt.err (!%p502_p2)
}
   0x8   :  { %s506_s10 = scalar_lea.vmem %s20_s25, 128  ;;  %p511_p4 = scmp.lt.s32.totalorder %s20_s25, %s20_s25 }
   0x9   :  { %p507_p3 = scmp.ne.s32.totalorder %s20_s25, %s506_s10  ;;  %p512_p5 = scmp.lt.s32.totalorder %s506_s10, %s506_s10 }
   0xb   :  { %p513_p6 = por %p512_p5, %p511_p4 }
   0xd   :  { %p514_p7 = pnand %p513_p6, %p507_p3 }
   0xf   :  { %517 = shalt.err (!%p514_p7)
}
  0x10   :  { %s545_s11 = smov 64   ;;  %s546_s12 = smov 4  }
  0x11   :  { %25 = dma.hbm_to_vmem [thread:$0]  %s707_s0, 128, %s20_s25, [#allocation3], %s545_s11, %s545_s11, %s546_s12  }
  0x12   :  { %540 = dma.done.wait [#allocation3], 128  }
  0x13   :  { %541 = vsyncadd [#allocation3], 4294967168  ;;  %v547_v0 = vmov 0.0   ;;  %vm548_vm0 = vmmov 0   ;;  %v477_v1 = vld [vmem:[%s708_s1] sm:$0xff]   ;;  %v478_v2 = vld [vmem:[%s708_s1 + $0x8] sm:$0xff]  }
  0x14   :  { %423 = vmatprep.subr.bf16.mxu0 %v547_v0  ;;  %427 = vmatprep.mubr.msk.bf16.mxu0 %vm548_vm0, %v547_v0  ;;  %v480_v3 = vld [vmem:[%s710_s3] sm:$0xff]   ;;  %v481_v5 = vld [vmem:[%s710_s3 + $0x8] sm:$0xff]   ;;  %vm72_vm1 = vcmask 261120   ;;  %v482_v6 = vld [vmem:[%s710_s3 + $0x10] sm:$0xff]   ;;  %vm355_vm2 = vcmask 125952  }
  0x15   :  { %431 = vmatprep.subr.bf16.mxu1 %v547_v0  ;;  %447 = vmatprep.mubr.msk.bf16.mxu1 %vm548_vm0, %v547_v0  ;;  %v479_v4 = vld [vmem:[#allocation2] sm:$0xff]   ;;  %v483_v7 = vld [vmem:[%s710_s3 + $0x18] sm:$0xff]   ;;  %v485_v9 = vld [vmem:[%s710_s3 + $0x28] sm:$0xff]  }
  0x16   :  { %424 = vmatpush3.bf16.msra.mxu0 %v477_v1  ;;  %432 = vmatpush3.bf16.msra.mxu1 %v480_v3  ;;  %v484_v8 = vld [vmem:[%s710_s3 + $0x20] sm:$0xff]   ;;  %v486_v10 = vld [vmem:[%s710_s3 + $0x30] sm:$0xff]   ;;  %v487_v11 = vld [vmem:[%s710_s3 + $0x38] sm:$0xff]  }
  0x17   :  { %425 = vmatprep.subr.bf16.mxu0 %v547_v0  ;;  %433 = vmatprep.subr.bf16.mxu1 %v547_v0  ;;  %v488_v12 = vld [vmem:[%s712_s5] sm:$0xff]   ;;  %v489_v13 = vld [vmem:[%s712_s5 + $0x8] sm:$0xff]   ;;  %v490_v14 = vld [vmem:[%s712_s5 + $0x10] sm:$0xff]  }
  0x18   :  { %v491_v15 = vld [vmem:[%s712_s5 + $0x18] sm:$0xff]   ;;  %v492_v16 = vld [vmem:[%s712_s5 + $0x20] sm:$0xff]   ;;  %v493_v17 = vld [vmem:[%s712_s5 + $0x28] sm:$0xff]  }
  0x19   :  { %v375_v18 = vld [vmem:[%s709_s2] ss:$0 sm:$0xff]  ;;  %v494_v28 = vld [vmem:[%s712_s5 + $0x30] sm:$0xff]   ;;  %v495_v29 = vld [vmem:[%s712_s5 + $0x38] sm:$0xff]  }
  0x1a   :  { %426 = vmatpush3.bf16.msra.mxu0 %v478_v2  ;;  %434 = vmatpush3.bf16.msra.mxu1 %v481_v5  ;;  %v380_v30 = vld [vmem:[%s711_s4] ss:$0 sm:$0xff]  ;;  %s549_s4 = smov [#allocation5]  }
  0x1b   :  { %451 = vmatprep.subr.bf16.mxu0 %v547_v0  ;;  %435 = vmatprep.subr.bf16.mxu1 %v547_v0  ;;  %v389_v40 = vld [vmem:[%s713_s6] ss:$0 sm:$0xff]  ;;  %s363_s5 = sshll.u32 %s549_s4, 4  ;;  %s364_s5 = int_to_ptr.vmem [resolvable:$true] %s363_s5 }
  0x1c   :  { %s518_s30 = scalar_lea.vmem %s364_s5, 128  ;;  %p523_p9 = scmp.lt.s32.totalorder %s364_s5, %s364_s5 }
  0x1d   :  { %428 = vmatmul.mubr.msk.bf16.vlgmr.msra.gmra.mrb[0].mxu0 %vm72_vm1, %v479_v4  ;;  %p519_p8 = scmp.ne.s32.totalorder %s364_s5, %s518_s30  ;;  %p524_p10 = scmp.lt.s32.totalorder %s518_s30, %s518_s30 }
  0x1e   :  { %467 = vmatprep.mubr.msk.bf16.mxu0 %vm548_vm0, %v547_v0  ;;  %436 = vmatpush3.bf16.msra.mxu1 %v482_v6 }
  0x1f   :  { %437 = vmatprep.subr.bf16.mxu1 %v547_v0  ;;  %452 = vmatpush3.bf16.msra.mxu0 %v488_v12  ;;  %p525_p11 = por %p524_p10, %p523_p9 }
  0x20   :  { %453 = vmatprep.subr.bf16.mxu0 %v547_v0 }
  0x21   :  { %p526_p12 = pnand %p525_p11, %p519_p8 }
  0x22   :  { %438 = vmatpush3.bf16.msra.mxu1 %v483_v7 }
  0x23   :  { %439 = vmatprep.subr.bf16.mxu1 %v547_v0  ;;  %454 = vmatpush3.bf16.msra.mxu0 %v489_v13 }
  0x24   :  { %455 = vmatprep.subr.bf16.mxu0 %v547_v0 }
  0x26   :  { %440 = vmatpush3.bf16.msra.mxu1 %v484_v8 }
  0x27   :  { %441 = vmatprep.subr.bf16.mxu1 %v547_v0  ;;  %456 = vmatpush3.bf16.msra.mxu0 %v490_v14 }
  0x28   :  { %457 = vmatprep.subr.bf16.mxu0 %v547_v0 }
  0x2a   :  { %442 = vmatpush3.bf16.msra.mxu1 %v485_v9 }
  0x2b   :  { %443 = vmatprep.subr.bf16.mxu1 %v547_v0  ;;  %458 = vmatpush3.bf16.msra.mxu0 %v491_v15 }
  0x2c   :  { %459 = vmatprep.subr.bf16.mxu0 %v547_v0 }
  0x2e   :  { %444 = vmatpush3.bf16.msra.mxu1 %v486_v10 }
  0x2f   :  { %445 = vmatprep.subr.bf16.mxu1 %v547_v0  ;;  %460 = vmatpush3.bf16.msra.mxu0 %v492_v16 }
  0x30   :  { %461 = vmatprep.subr.bf16.mxu0 %v547_v0 }
  0x32   :  { %446 = vmatpush3.bf16.msra.mxu1 %v487_v11 }
  0x33   :  { %462 = vmatpush3.bf16.msra.mxu0 %v493_v17 }
  0x34   :  { %463 = vmatprep.subr.bf16.mxu0 %v547_v0 }
  0x37   :  { %464 = vmatpush3.bf16.msra.mxu0 %v494_v28 }
  0x38   :  { %465 = vmatprep.subr.bf16.mxu0 %v547_v0 }
  0x3b   :  { %466 = vmatpush3.bf16.msra.mxu0 %v495_v29 }
  0xf0   :  { %v110_v19 = vpop.f32.mrb[0].mxu0 }
  0xf1   :  { %v111_v20 = vadd.f32 %v375_v18, %v110_v19  ;;  %v429_v21 = vpop.f32.mrb[1].mxu0 }
  0xf2   :  { %v113_v22 = vpop.f32.mrb[2].mxu0 }
  0xf3   :  { %v114_v23 = vadd.f32 %v375_v18, %v113_v22  ;;  %v430_v24 = vpop.f32.mrb[3].mxu0  ;;  %v117_v25 = vmax.f32 %v111_v20, 0.0 }
  0xf5   :  { %v118_v26 = vmax.f32 %v114_v23, 0.0 }
  0xf7   :  { %v119_v27 = vpack.c.bf16 %v118_v26, %v117_v25 }
  0xf9   :  { %448 = vmatmul.mubr.bf16.vlgmr.msra.gmra.mrb[0].mxu1 %v119_v27 }
 0x1cc   :  { %v225_v31 = vpop.f32.mrb[0].mxu1 }
 0x1cd   :  { %v226_v32 = vadd.f32 %v380_v30, %v225_v31  ;;  %v449_v33 = vpop.f32.mrb[1].mxu1 }
 0x1ce   :  { %v228_v34 = vpop.f32.mrb[2].mxu1 }
 0x1cf   :  { %v229_v35 = vadd.f32 %v380_v30, %v228_v34  ;;  %v450_v36 = vpop.f32.mrb[3].mxu1  ;;  %v232_v37 = vmax.f32 %v226_v32, 0.0 }
 0x1d1   :  { %v233_v38 = vmax.f32 %v229_v35, 0.0 }
 0x1d3   :  { %v234_v39 = vpack.c.bf16 %v233_v38, %v232_v37 }
 0x1d5   :  { %468 = vmatmul.mubr.bf16.vlgmr.msra.gmra.mrb[4].mxu0 %v234_v39 }
 0x2a8   :  { %v340_v41 = vpop.f32.mrb[4].mxu0 }
 0x2a9   :  { %v341_v42 = vadd.f32 %v389_v40, %v340_v41  ;;  %v469_v43 = vpop.f32.mrb[5].mxu0 }
 0x2aa   :  { %v343_v44 = vpop.f32.mrb[6].mxu0 }
 0x2ab   :  { %v400_v45 = vpack.c.bf16 %v341_v42, %v341_v42  ;;  %v344_v46 = vadd.f32 %v389_v40, %v343_v44  ;;  %v470_v47 = vpop.f32.mrb[7].mxu0 }
 0x2ad   :  { %v401_v48 = vpack.c.bf16 %v344_v46, %v344_v46  ;;  %356 = vst.msk [vmem:[#allocation5] sm:$0xf] %vm355_vm2, %v400_v45 }
 0x2af   :  { %357 = vst.msk [vmem:[#allocation5 + $0x4] sm:$0xf] %vm355_vm2, %v401_v48 }
 0x2b0   :  { %529 = shalt.err (!%p526_p12)
}
 0x2b1   :  { %s530_s9 = scalar_lea.hbm %s714_s7, 128 }
 0x2b2   :  { %p531_p13 = scmp.ne.s32.totalorder %s714_s7, %s530_s9  ;;  %p534_p0 = scmp.lt.u32.totalorder %s530_s9, %s714_s7 }
 0x2b4   :  { %p536_p1 = pnand %p534_p0, %p531_p13 }
 0x2b6   :  { %539 = shalt.err (!%p536_p1)
}
 0x2b7   :  { %369 = dma.vmem_to_hbm [thread:$0]  %s364_s5, 128, %s714_s7, [#allocation4], %s545_s11, %s545_s11, %s546_s12  }
 0x2b8   :  { %542 = dma.done.wait [#allocation4], 128  }
 0x2b9   :  { %543 = vsyncadd [#allocation4], 4294967168 }
 0x2ba   :  { %373 = vsyncpa [#allocation3], 1 }
 0x2bb   :  { %374 = vsyncpa [#allocation4], 1 }

</bundles_post_ra>
